<compile_context>
chip_gen: v6e
topology: v6e:2x2x1
jax: 0.10.0
libtpu: 0.0.40
codegen_flags: <defaults>
</compile_context>

<pallas_src>
import jax
import jax.numpy as jnp
from jax.experimental import pallas as pl
from jax.experimental.pallas import tpu as pltpu

K_IN = 28 * 28      # 784, fed at full extent (Mosaic pads K inside VMEM anyway)
HIDDEN = 128
N_CLASSES = 10
N_PAD = 128         # lane-dense padded class dimension


def _mlp_softmax_kernel(x_ref, w1_ref, b1_ref, w2_ref, b2_ref, w3_ref, b3_ref,
                        o_ref):
    # x tile streamed as f32 (single HBM read); cast to bf16 in-register for MXU.
    x = x_ref[...].astype(jnp.bfloat16)

    h1 = jnp.dot(x, w1_ref[...], preferred_element_type=jnp.float32) + b1_ref[...]
    h1 = jnp.maximum(h1, 0.0).astype(jnp.bfloat16)            # ReLU (f32 compare)

    h2 = jnp.dot(h1, w2_ref[...], preferred_element_type=jnp.float32) + b2_ref[...]
    h2 = jnp.maximum(h2, 0.0).astype(jnp.bfloat16)            # ReLU (f32 compare)

    logits = jnp.dot(h2, w3_ref[...], preferred_element_type=jnp.float32) + b3_ref[...]

    # Numerically stable softmax over the padded (lane-dense) class dim.
    # Padded classes carry a -1e9 f32 bias -> exp underflows to exactly 0, so the
    # first 10 probabilities match the unpadded softmax. Exact division: rows sum
    # to 1 at f32 accuracy.
    m = jnp.max(logits, axis=-1, keepdims=True)
    e = jnp.exp(logits - m)
    denom = jnp.sum(e, axis=-1, keepdims=True)
    o_ref[...] = (e / denom).astype(o_ref.dtype)


def fashion_mnist_tutorial_forward(x_nchw, params, *, tb=256):
    """x_nchw: (B, 1, 28, 28) float32. Returns (B, 10) softmax probabilities."""
    w1, b1, w2, b2, w3, b3 = params
    B = x_nchw.shape[0]
    # torch.flatten(x, 1); no padding / dtype copy of the activations.
    x_flat = x_nchw.reshape(B, -1).astype(jnp.float32)        # (B, 784)

    # One-time (tiny) weight conversions; biases stay f32.
    w1_b = w1.astype(jnp.bfloat16)                            # (784, 128)
    w2_b = w2.astype(jnp.bfloat16)                            # (128, 128)
    w3_p = jnp.pad(w3, ((0, 0), (0, N_PAD - N_CLASSES))).astype(jnp.bfloat16)
    b1_f = b1.astype(jnp.float32)
    b2_f = b2.astype(jnp.float32)
    b3_p = jnp.concatenate(
        [b3.astype(jnp.float32),
         jnp.full((1, N_PAD - N_CLASSES), -1e9, jnp.float32)], axis=1)

    # Batch tiling: no wrapper batch pad. If B < tb use a single full-extent tile;
    # otherwise rely on Pallas partial boundary blocks for a ragged last tile
    # (out-of-range rows are never written back).
    tb_eff = min(tb, B)
    n_tiles = pl.cdiv(B, tb_eff)

    def resident(shape):
        # Constant index_map -> DMA'd once, stays VMEM-resident across batch tiles.
        return pl.BlockSpec(shape, lambda i: (0, 0))

    cost = pl.CostEstimate(
        flops=2 * B * (K_IN * HIDDEN + HIDDEN * HIDDEN + HIDDEN * N_PAD),
        transcendentals=B * N_PAD,                             # exp
        bytes_accessed=(x_flat.size * 4
                        + (w1_b.size + w2_b.size + w3_p.size) * 2
                        + (b1_f.size + b2_f.size + b3_p.size) * 4
                        + B * N_PAD * 4),
    )

    out_padded = pl.pallas_call(
        _mlp_softmax_kernel,
        out_shape=jax.ShapeDtypeStruct((B, N_PAD), jnp.float32),
        grid=(n_tiles,),
        in_specs=[
            pl.BlockSpec((tb_eff, K_IN), lambda i: (i, 0)),    # x tiles (pipelined)
            resident((K_IN, HIDDEN)),                          # w1
            resident((1, HIDDEN)),                             # b1
            resident((HIDDEN, HIDDEN)),                        # w2
            resident((1, HIDDEN)),                             # b2
            resident((HIDDEN, N_PAD)),                         # w3 (class-padded)
            resident((1, N_PAD)),                              # b3 (class-padded)
        ],
        out_specs=pl.BlockSpec((tb_eff, N_PAD), lambda i: (i, 0)),
        compiler_params=pltpu.CompilerParams(
            dimension_semantics=("parallel",)),
        cost_estimate=cost,
    )(x_flat, w1_b, b1_f, w2_b, b2_f, w3_p, b3_p)

    return out_padded[:, :N_CLASSES]


def init_params(key):
    """Deterministic synthetic params (PyTorch Linear init, pre-transposed to (in, out))."""
    k1, k2, k3, k4, k5, k6 = jax.random.split(key, 6)

    def lin(kw, kb, fan_in, fan_out):
        bound = 1.0 / (fan_in ** 0.5)
        w = jax.random.uniform(kw, (fan_in, fan_out), jnp.float32, -bound, bound)
        b = jax.random.uniform(kb, (1, fan_out), jnp.float32, -bound, bound)
        return w, b

    w1, b1 = lin(k1, k2, 28 * 28, 128)
    w2, b2 = lin(k3, k4, 128, 128)
    w3, b3 = lin(k5, k6, 128, 10)
    return (w1, b1, w2, b2, w3, b3)


def reference_forward(x_nchw, params):
    """Pure-JAX f32 reference of the PyTorch forward (flatten -> 3x Linear -> softmax)."""
    w1, b1, w2, b2, w3, b3 = params
    x = x_nchw.reshape(x_nchw.shape[0], -1)
    h1 = jnp.maximum(x @ w1 + b1, 0.0)
    h2 = jnp.maximum(h1 @ w2 + b2, 0.0)
    logits = h2 @ w3 + b3
    return jax.nn.softmax(logits, axis=-1)


if __name__ == "__main__":
    key = jax.random.PRNGKey(0)
    kx, kp = jax.random.split(key)

    # Small correctness-test batch (single full-extent tile, grid=(1,)).
    B = 32
    x = jax.random.normal(kx, (B, 1, 28, 28), dtype=jnp.float32)  # NCHW like PyTorch
    params = init_params(kp)

    out = fashion_mnist_tutorial_forward(x, params)
    out = jax.block_until_ready(out)

    ref = reference_forward(x, params)
    assert out.shape == (B, N_CLASSES)
    # Exact division -> rows sum to 1 at f32 accuracy.
    assert bool(jnp.allclose(jnp.sum(out, axis=-1), 1.0, atol=1e-4))
    # bf16 weights/activations on the MXU vs f32 reference (inference accuracy contract).
    assert float(jnp.max(jnp.abs(out - ref))) < 2e-2

    print("KERNEL_OK")
</pallas_src>

<mosaic_0001>
module attributes {stable_mosaic.version = 11 : i64} {
  func.func @_mlp_softmax_kernel(%arg0: i32, %arg1: memref<32x784xf32, #tpu.memory_space<vmem>>, %arg2: memref<784x128xbf16, #tpu.memory_space<vmem>>, %arg3: memref<1x128xf32, #tpu.memory_space<vmem>>, %arg4: memref<128x128xbf16, #tpu.memory_space<vmem>>, %arg5: memref<1x128xf32, #tpu.memory_space<vmem>>, %arg6: memref<128x128xbf16, #tpu.memory_space<vmem>>, %arg7: memref<1x128xf32, #tpu.memory_space<vmem>>, %arg8: memref<32x128xf32, #tpu.memory_space<vmem>>) attributes {dimension_semantics = [#tpu.dimension_semantics<parallel>], iteration_bounds = array<i64: 1>, scalar_prefetch = 0 : i64, scratch_operands = 0 : i64, tpu.core_type = #tpu.core_type<tc>, window_params = [{transform_indices = @transform_0, window_bounds = array<i64: 32, 784>}, {pipeline_mode = #tpu.pipeline_mode<synchronous>, transform_indices = @transform_1, window_bounds = array<i64: 784, 128>}, {pipeline_mode = #tpu.pipeline_mode<synchronous>, transform_indices = @transform_2, window_bounds = array<i64: 1, 128>}, {pipeline_mode = #tpu.pipeline_mode<synchronous>, transform_indices = @transform_3, window_bounds = array<i64: 128, 128>}, {pipeline_mode = #tpu.pipeline_mode<synchronous>, transform_indices = @transform_4, window_bounds = array<i64: 1, 128>}, {pipeline_mode = #tpu.pipeline_mode<synchronous>, transform_indices = @transform_5, window_bounds = array<i64: 128, 128>}, {pipeline_mode = #tpu.pipeline_mode<synchronous>, transform_indices = @transform_6, window_bounds = array<i64: 1, 128>}, {transform_indices = @transform_7, window_bounds = array<i64: 32, 128>}]} {
    %c0 = arith.constant 0 : index
    %c0_0 = arith.constant 0 : index
    %0 = vector.load %arg1[%c0, %c0_0] : memref<32x784xf32, #tpu.memory_space<vmem>>, vector<32x784xf32>
    %1 = arith.truncf %0 : vector<32x784xf32> to vector<32x784xbf16>
    %c0_1 = arith.constant 0 : index
    %c0_2 = arith.constant 0 : index
    %2 = vector.load %arg2[%c0_1, %c0_2] : memref<784x128xbf16, #tpu.memory_space<vmem>>, vector<784x128xbf16>
    %cst = arith.constant dense<0.000000e+00> : vector<32x128xf32>
    %3 = tpu.matmul %1, %2, %cst {dimension_numbers = #tpu.dot_dimension_numbers<[1], [0], [0], [1], [0, 0, 1, 1], [], []>} : vector<32x784xbf16>, vector<784x128xbf16>, vector<32x128xf32> -> vector<32x128xf32>
    %c0_3 = arith.constant 0 : index
    %c0_4 = arith.constant 0 : index
    %4 = vector.load %arg3[%c0_3, %c0_4] : memref<1x128xf32, #tpu.memory_space<vmem>>, vector<1x128xf32>
    %5 = vector.broadcast %4 : vector<1x128xf32> to vector<32x128xf32>
    %6 = arith.addf %3, %5 : vector<32x128xf32>
    %cst_5 = arith.constant 0.000000e+00 : f32
    %7 = vector.broadcast %cst_5 : f32 to vector<32x128xf32>
    %8 = arith.maximumf %6, %7 : vector<32x128xf32>
    %9 = arith.truncf %8 : vector<32x128xf32> to vector<32x128xbf16>
    %c0_6 = arith.constant 0 : index
    %c0_7 = arith.constant 0 : index
    %10 = vector.load %arg4[%c0_6, %c0_7] : memref<128x128xbf16, #tpu.memory_space<vmem>>, vector<128x128xbf16>
    %cst_8 = arith.constant dense<0.000000e+00> : vector<32x128xf32>
    %11 = tpu.matmul %9, %10, %cst_8 {dimension_numbers = #tpu.dot_dimension_numbers<[1], [0], [0], [1], [0, 0, 1, 1], [], []>} : vector<32x128xbf16>, vector<128x128xbf16>, vector<32x128xf32> -> vector<32x128xf32>
    %c0_9 = arith.constant 0 : index
    %c0_10 = arith.constant 0 : index
    %12 = vector.load %arg5[%c0_9, %c0_10] : memref<1x128xf32, #tpu.memory_space<vmem>>, vector<1x128xf32>
    %13 = vector.broadcast %12 : vector<1x128xf32> to vector<32x128xf32>
    %14 = arith.addf %11, %13 : vector<32x128xf32>
    %cst_11 = arith.constant 0.000000e+00 : f32
    %15 = vector.broadcast %cst_11 : f32 to vector<32x128xf32>
    %16 = arith.maximumf %14, %15 : vector<32x128xf32>
    %17 = arith.truncf %16 : vector<32x128xf32> to vector<32x128xbf16>
    %c0_12 = arith.constant 0 : index
    %c0_13 = arith.constant 0 : index
    %18 = vector.load %arg6[%c0_12, %c0_13] : memref<128x128xbf16, #tpu.memory_space<vmem>>, vector<128x128xbf16>
    %cst_14 = arith.constant dense<0.000000e+00> : vector<32x128xf32>
    %19 = tpu.matmul %17, %18, %cst_14 {dimension_numbers = #tpu.dot_dimension_numbers<[1], [0], [0], [1], [0, 0, 1, 1], [], []>} : vector<32x128xbf16>, vector<128x128xbf16>, vector<32x128xf32> -> vector<32x128xf32>
    %c0_15 = arith.constant 0 : index
    %c0_16 = arith.constant 0 : index
    %20 = vector.load %arg7[%c0_15, %c0_16] : memref<1x128xf32, #tpu.memory_space<vmem>>, vector<1x128xf32>
    %21 = vector.broadcast %20 : vector<1x128xf32> to vector<32x128xf32>
    %22 = arith.addf %19, %21 : vector<32x128xf32>
    %cst_17 = arith.constant dense<0xFF800000> : vector<32xf32>
    %23 = vector.multi_reduction <maximumf>, %22, %cst_17 [1] : vector<32x128xf32> to vector<32xf32>
    %24 = vector.shape_cast %23 : vector<32xf32> to vector<32x1xf32>
    %25 = vector.broadcast %24 : vector<32x1xf32> to vector<32x128xf32>
    %26 = arith.subf %22, %25 : vector<32x128xf32>
    %27 = math.exp %26 : vector<32x128xf32>
    %cst_18 = arith.constant dense<0.000000e+00> : vector<32xf32>
    %28 = vector.multi_reduction <add>, %27, %cst_18 [1] : vector<32x128xf32> to vector<32xf32>
    %29 = vector.shape_cast %28 : vector<32xf32> to vector<32x1xf32>
    %30 = vector.broadcast %29 : vector<32x1xf32> to vector<32x128xf32>
    %31 = arith.divf %27, %30 : vector<32x128xf32>
    %c0_19 = arith.constant 0 : index
    %c0_20 = arith.constant 0 : index
    %32 = vector.load %arg8[%c0_19, %c0_20] : memref<32x128xf32, #tpu.memory_space<vmem>>, vector<32x128xf32>
    tpu.vector_store %arg8[%c0_19, %c0_20], %31 {strides = array<i32>} : memref<32x128xf32, #tpu.memory_space<vmem>>, vector<32x128xf32>,
    return
  }
  func.func @transform_0(%arg0: i32) -> (i32, i32) {
    %c0_i32 = arith.constant 0 : i32
    %c0_i32_0 = arith.constant 0 : i32
    return %arg0, %c0_i32 : i32, i32
  }
  func.func @transform_1(%arg0: i32) -> (i32, i32) {
    %c0_i32 = arith.constant 0 : i32
    %c0_i32_0 = arith.constant 0 : i32
    %c0_i32_1 = arith.constant 0 : i32
    return %c0_i32, %c0_i32_0 : i32, i32
  }
  func.func @transform_2(%arg0: i32) -> (i32, i32) {
    %c0_i32 = arith.constant 0 : i32
    %c0_i32_0 = arith.constant 0 : i32
    %c0_i32_1 = arith.constant 0 : i32
    return %c0_i32, %c0_i32_0 : i32, i32
  }
  func.func @transform_3(%arg0: i32) -> (i32, i32) {
    %c0_i32 = arith.constant 0 : i32
    %c0_i32_0 = arith.constant 0 : i32
    %c0_i32_1 = arith.constant 0 : i32
    return %c0_i32, %c0_i32_0 : i32, i32
  }
  func.func @transform_4(%arg0: i32) -> (i32, i32) {
    %c0_i32 = arith.constant 0 : i32
    %c0_i32_0 = arith.constant 0 : i32
    %c0_i32_1 = arith.constant 0 : i32
    return %c0_i32, %c0_i32_0 : i32, i32
  }
  func.func @transform_5(%arg0: i32) -> (i32, i32) {
    %c0_i32 = arith.constant 0 : i32
    %c0_i32_0 = arith.constant 0 : i32
    %c0_i32_1 = arith.constant 0 : i32
    return %c0_i32, %c0_i32_0 : i32, i32
  }
  func.func @transform_6(%arg0: i32) -> (i32, i32) {
    %c0_i32 = arith.constant 0 : i32
    %c0_i32_0 = arith.constant 0 : i32
    %c0_i32_1 = arith.constant 0 : i32
    return %c0_i32, %c0_i32_0 : i32, i32
  }
  func.func @transform_7(%arg0: i32) -> (i32, i32) {
    %c0_i32 = arith.constant 0 : i32
    %c0_i32_0 = arith.constant 0 : i32
    return %arg0, %c0_i32 : i32, i32
  }
}

</mosaic_0001>

<bundles_post_ra>
// kernel: tpu_custom_call.1
= control target key start
LH: loop header
LB: loop body
LE: loop exit
PB: predicated region body
PF: predicated region fallthrough
CT: control target
= control target key end

     0   :  { %12 = vsyncpa [#allocation3], 0  ;;  %s1545_s0 = inlined_call_operand.hbm [shape: f32[32,784], index: 0, kind: input, shape index: {}]   ;;  %s1546_s1 = inlined_call_operand.hbm [shape: bf16[784,128], index: 1, kind: input, shape index: {}]   ;;  %s1547_s2 = inlined_call_operand.vmem [shape: f32[1,128], index: 2, kind: input, shape index: {}]   ;;  %s1548_s3 = inlined_call_operand.hbm [shape: bf16[128,128], index: 3, kind: input, shape index: {}]   ;;  %s1549_s4 = inlined_call_operand.vmem [shape: f32[1,128], index: 4, kind: input, shape index: {}]   ;;  %s1550_s5 = inlined_call_operand.hbm [shape: bf16[128,128], index: 5, kind: input, shape index: {}]   ;;  %s1551_s6 = inlined_call_operand.vmem [shape: f32[1,128], index: 6, kind: input, shape index: {}]   ;;  %s1552_s7 = inlined_call_operand.hbm [shape: f32[32,128], index: 7, kind: output, shape index: {}]  }
   0x1   :  { %13 = vsyncpa [#allocation6], 0 }
   0x2   :  { %14 = vsyncpa [#allocation9], 0 }
   0x3   :  { %15 = vsyncpa [#allocation4], 0  ;;  %s1461_s24 = smov [#allocation5]  }
   0x4   :  { %s33_s25 = sshll.u32 %s1461_s24, 4  ;;  %s34_s25 = int_to_ptr.vmem [resolvable:$true] %s33_s25 }
   0x5   :  { %s1361_s26 = scalar_lea.vmem %s34_s25, 6272  ;;  %p1366_p1 = scmp.lt.s32.totalorder %s34_s25, %s34_s25 }
   0x6   :  { %p1362_p0 = scmp.ne.s32.totalorder %s34_s25, %s1361_s26  ;;  %p1367_p2 = scmp.lt.s32.totalorder %s1361_s26, %s1361_s26 }
   0x8   :  { %p1368_p3 = por %p1367_p2, %p1366_p1 }
   0xa   :  { %p1369_p4 = pnand %p1368_p3, %p1362_p0 }
   0xc   :  { %1372 = shalt.err (!%p1369_p4)
}
   0xd   :  { %s1462_s27 = smov 64   ;;  %s1463_s28 = smov 4  }
   0xe   :  { %39 = dma.hbm_to_vmem [thread:$0]  %s1546_s1, 6272, %s34_s25, [#allocation6], %s1462_s27, %s1462_s27, %s1463_s28  }
   0xf   :  { %s1464_s8 = smov [#allocation2]  }
  0x10   :  { %s21_s9 = sshll.u32 %s1464_s8, 4  ;;  %s22_s9 = int_to_ptr.vmem [resolvable:$true] %s21_s9 }
  0x11   :  { %s1381_s10 = scalar_lea.vmem %s22_s9, 3584  ;;  %p1386_p6 = scmp.lt.s32.totalorder %s22_s9, %s22_s9 }
  0x12   :  { %p1382_p5 = scmp.ne.s32.totalorder %s22_s9, %s1381_s10  ;;  %p1387_p7 = scmp.lt.s32.totalorder %s1381_s10, %s1381_s10 }
  0x14   :  { %p1388_p8 = por %p1387_p7, %p1386_p6 }
  0x16   :  { %p1389_p9 = pnand %p1388_p8, %p1382_p5 }
  0x18   :  { %1392 = shalt.err (!%p1389_p9)
}
  0x19   :  { %s1465_s11 = smov 896   ;;  %s1466_s12 = smov 56  }
  0x1a   :  { %27 = dma.hbm_to_vmem [thread:$0]  %s1545_s0, 3584, %s22_s9, [#allocation3], %s1465_s11, %s1465_s11, %s1466_s12  }
  0x1b   :  { %s1467_s15 = smov [#allocation7]   ;;  %s1468_s17 = smov [#allocation8]  }
  0x1c   :  { %s47_s16 = sshll.u32 %s1467_s15, 4  ;;  %s61_s1 = sshll.u32 %s1468_s17, 4  ;;  %s48_s16 = int_to_ptr.vmem [resolvable:$true] %s47_s16  ;;  %s62_s1 = int_to_ptr.vmem [resolvable:$true] %s61_s1 }
  0x1d   :  { %s1401_s18 = scalar_lea.vmem %s48_s16, 1024  ;;  %p1406_p11 = scmp.lt.s32.totalorder %s48_s16, %s48_s16 }
  0x1e   :  { %p1402_p10 = scmp.ne.s32.totalorder %s48_s16, %s1401_s18  ;;  %p1407_p12 = scmp.lt.s32.totalorder %s1401_s18, %s1401_s18 }
  0x20   :  { %p1408_p13 = por %p1407_p12, %p1406_p11 }
  0x22   :  { %p1409_p0 = pnand %p1408_p13, %p1402_p10 }
  0x24   :  { %1412 = shalt.err (!%p1409_p0)
}
  0x25   :  { %53 = dma.hbm_to_vmem [thread:$0]  %s1548_s3, 1024, %s48_s16, [#allocation6], %s1462_s27, %s1462_s27, %s1463_s28  }
  0x26   :  { %s1421_s0 = scalar_lea.vmem %s62_s1, 1024  ;;  %p1426_p2 = scmp.lt.s32.totalorder %s62_s1, %s62_s1 }
  0x27   :  { %p1422_p1 = scmp.ne.s32.totalorder %s62_s1, %s1421_s0  ;;  %p1427_p3 = scmp.lt.s32.totalorder %s1421_s0, %s1421_s0 }
  0x29   :  { %p1428_p4 = por %p1427_p3, %p1426_p2 }
  0x2b   :  { %p1429_p5 = pnand %p1428_p4, %p1422_p1 }
  0x2d   :  { %1432 = shalt.err (!%p1429_p5)
}
  0x2e   :  { %67 = dma.hbm_to_vmem [thread:$0]  %s1550_s5, 1024, %s62_s1, [#allocation9], %s1462_s27, %s1462_s27, %s1463_s28  }
  0x2f   :  { %1453 = dma.done.wait [#allocation3], 3584  }
  0x30   :  { %1454 = vsyncadd [#allocation3], 4294963712 }
  0x31   :  { %1455 = dma.done.wait [#allocation6], 7296  }
  0x32   :  { %1456 = vsyncadd [#allocation6], 4294960000 }
  0x33   :  { %1457 = dma.done.wait [#allocation9], 1024  }
  0x34   :  { %1458 = vsyncadd [#allocation9], 4294966272  ;;  %v1272_v0 = vld [vmem:[#allocation5 + $0x78] sm:$0xff]   ;;  %v1276_v4 = vld [vmem:[#allocation5 + $0x70] sm:$0xff]   ;;  %vm524_vm0 = vcmask 130048  }
  0x35   :  { %v1273_v1 = vld [vmem:[#allocation5 + $0x38] sm:$0xff]   ;;  %1108 = vmatprep.subr.bf16.mxu0 %v1272_v0  ;;  %v1277_v5 = vld [vmem:[#allocation5 + $0x30] sm:$0xff]   ;;  %v1280_v8 = vld [vmem:[#allocation5 + $0x68] sm:$0xff]  }
  0x36   :  { %v1274_v2 = vld [vmem:[#allocation5 + $0xf8] sm:$0xff]   ;;  %1109 = vmatpush3.bf16.msra.mxu0 %v1273_v1  ;;  %v1278_v6 = vld [vmem:[#allocation5 + $0xf0] sm:$0xff]   ;;  %v1281_v9 = vld [vmem:[#allocation5 + $0x28] sm:$0xff]  }
  0x37   :  { %v1275_v3 = vld [vmem:[#allocation5 + $0xb8] sm:$0xff]   ;;  %1136 = vmatprep.subr.bf16.mxu1 %v1274_v2  ;;  %1110 = vmatprep.subr.bf16.mxu0 %v1276_v4  ;;  %v1279_v7 = vld [vmem:[#allocation5 + $0xb0] sm:$0xff]   ;;  %v1282_v10 = vld [vmem:[#allocation5 + $0xe8] sm:$0xff]  }
  0x38   :  { %1137 = vmatpush3.bf16.msra.mxu1 %v1275_v3  ;;  %v1283_v11 = vld [vmem:[#allocation5 + $0xa8] sm:$0xff]   ;;  %v1284_v12 = vld [vmem:[#allocation5 + $0x60] sm:$0xff]   ;;  %v1288_v16 = vld [vmem:[#allocation5 + $0x58] sm:$0xff]  }
  0x39   :  { %1138 = vmatprep.subr.bf16.mxu1 %v1278_v6  ;;  %v1285_v13 = vld [vmem:[#allocation5 + $0x20] sm:$0xff]   ;;  %v1289_v17 = vld [vmem:[#allocation5 + $0x18] sm:$0xff]   ;;  %v1292_v20 = vld [vmem:[#allocation5 + $0x50] sm:$0xff]  }
  0x3a   :  { %1111 = vmatpush3.bf16.msra.mxu0 %v1277_v5  ;;  %v1286_v14 = vld [vmem:[#allocation5 + $0xe0] sm:$0xff]   ;;  %v1290_v18 = vld [vmem:[#allocation5 + $0xd8] sm:$0xff]   ;;  %v1293_v21 = vld [vmem:[#allocation5 + $0x10] sm:$0xff]  }
  0x3b   :  { %1112 = vmatprep.subr.bf16.mxu0 %v1280_v8  ;;  %v1287_v15 = vld [vmem:[#allocation5 + $0xa0] sm:$0xff]   ;;  %v1291_v19 = vld [vmem:[#allocation5 + $0x98] sm:$0xff]   ;;  %v1294_v22 = vld [vmem:[#allocation5 + $0xd0] sm:$0xff]  }
  0x3c   :  { %1139 = vmatpush3.bf16.msra.mxu1 %v1279_v7  ;;  %v1295_v23 = vld [vmem:[#allocation5 + $0x90] sm:$0xff]   ;;  %v1296_v24 = vld [vmem:[#allocation5 + $0x48] sm:$0xff]   ;;  %v1300_v28 = vld [vmem:[#allocation5 + $0x40] sm:$0xff]  }
  0x3d   :  { %1140 = vmatprep.subr.bf16.mxu1 %v1282_v10  ;;  %v1297_v25 = vld [vmem:[#allocation5 + $0x8] sm:$0xff]   ;;  %v1301_v29 = vld [vmem:[#allocation5] sm:$0xff]   ;;  %v90_v36 = vld [vmem:[#allocation2 + $0x38] sm:$0xff] }
  0x3e   :  { %1113 = vmatpush3.bf16.msra.mxu0 %v1281_v9  ;;  %v1298_v26 = vld [vmem:[#allocation5 + $0xc8] sm:$0xff]   ;;  %v1302_v30 = vld [vmem:[#allocation5 + $0xc0] sm:$0xff]   ;;  %v1304_v38 = vld [vmem:[#allocation5 + $0x178] sm:$0xff]  }
  0x3f   :  { %1114 = vmatprep.subr.bf16.mxu0 %v1284_v12  ;;  %v1299_v27 = vld [vmem:[#allocation5 + $0x88] sm:$0xff]   ;;  %v91_v32 = vld [vmem:[#allocation2 + $0x40] sm:$0xff]  ;;  %v86_v39 = vld [vmem:[#allocation2 + $0x18] sm:$0xff] }
  0x40   :  { %1141 = vmatpush3.bf16.msra.mxu1 %v1283_v11  ;;  %v84_v31 = vld [vmem:[#allocation2 + $0x8] sm:$0xff]  ;;  %v1303_v34 = vld [vmem:[#allocation5 + $0x80] sm:$0xff]   ;;  %v93_v40 = vld [vmem:[#allocation2 + $0x50] sm:$0xff] }
  0x41   :  { %1142 = vmatprep.subr.bf16.mxu1 %v1286_v14  ;;  %v112_v33 = vpack.c.bf16 %v91_v32, %v84_v31  ;;  %v83_v35 = vld [vmem:[#allocation2] sm:$0xff]  ;;  %v114_v41 = vpack.c.bf16 %v93_v40, %v86_v39  ;;  %v1305_v42 = vld [vmem:[#allocation5 + $0x138] sm:$0xff]   ;;  %v85_v43 = vld [vmem:[#allocation2 + $0x10] sm:$0xff] }
  0x42   :  { %1115 = vmatpush3.bf16.msra.mxu0 %v1285_v13  ;;  %v111_v37 = vpack.c.bf16 %v90_v36, %v83_v35  ;;  %v92_v44 = vld [vmem:[#allocation2 + $0x48] sm:$0xff]  ;;  %v1306_v46 = vld [vmem:[#allocation5 + $0x170] sm:$0xff]   ;;  %v1310_v50 = vld [vmem:[#allocation5 + $0x160] sm:$0xff]  }
  0x43   :  { %1116 = vmatprep.subr.bf16.mxu0 %v1288_v16  ;;  %563 = vmatprep.mubr.bf16.mxu0 %v112_v33  ;;  %v113_v45 = vpack.c.bf16 %v92_v44, %v85_v43  ;;  %v1307_v47 = vld [vmem:[#allocation5 + $0x130] sm:$0xff]   ;;  %v1308_v48 = vld [vmem:[#allocation5 + $0x168] sm:$0xff]   ;;  %v1311_v51 = vld [vmem:[#allocation5 + $0x120] sm:$0xff]  }
  0x44   :  { %1143 = vmatpush3.bf16.msra.mxu1 %v1287_v15  ;;  %612 = vmatprep.mubr.bf16.mxu1 %v114_v41  ;;  %v1309_v49 = vld [vmem:[#allocation5 + $0x128] sm:$0xff]   ;;  %v98_v52 = vld [vmem:[#allocation2 + $0x78] sm:$0xff]  ;;  %v105_v53 = vld [vmem:[#allocation2 + $0xb0] sm:$0xff] }
  0x45   :  { %1144 = vmatprep.subr.bf16.mxu1 %v1290_v18  ;;  %v1312_v54 = vld [vmem:[#allocation5 + $0x158] sm:$0xff]   ;;  %v119_v55 = vpack.c.bf16 %v105_v53, %v98_v52  ;;  %v97_v56 = vld [vmem:[#allocation2 + $0x70] sm:$0xff]  ;;  %v104_v57 = vld [vmem:[#allocation2 + $0xa8] sm:$0xff] }
  0x46   :  { %1117 = vmatpush3.bf16.msra.mxu0 %v1289_v17  ;;  %v118_v58 = vpack.c.bf16 %v104_v57, %v97_v56  ;;  %v100_v59 = vld [vmem:[#allocation2 + $0x88] sm:$0xff]  ;;  %v107_v60 = vld [vmem:[#allocation2 + $0xc0] sm:$0xff]  ;;  %v106_v63 = vld [vmem:[#allocation2 + $0xb8] sm:$0xff] }
  0x47   :  { %1118 = vmatprep.subr.bf16.mxu0 %v1292_v20  ;;  %v99_v61 = vld [vmem:[#allocation2 + $0x80] sm:$0xff]  ;;  %v121_v62 = vpack.c.bf16 %v107_v60, %v100_v59  ;;  %v1313_v1 = vld [vmem:[#allocation5 + $0x118] sm:$0xff]   ;;  %v1314_v2 = vld [vmem:[#allocation5 + $0x150] sm:$0xff]  }
  0x48   :  { %1145 = vmatpush3.bf16.msra.mxu1 %v1291_v19  ;;  %v120_v0 = vpack.c.bf16 %v106_v63, %v99_v61  ;;  %v1318_v3 = vld [vmem:[#allocation5 + $0x180] sm:$0xff]   ;;  %v1315_v4 = vld [vmem:[#allocation5 + $0x110] sm:$0xff]   ;;  %v1316_v5 = vld [vmem:[#allocation5 + $0x148] sm:$0xff]  }
  0x49   :  { %1146 = vmatprep.subr.bf16.mxu1 %v1294_v22  ;;  %v88_v6 = vld [vmem:[#allocation2 + $0x28] sm:$0xff]  ;;  %v95_v7 = vld [vmem:[#allocation2 + $0x60] sm:$0xff]  ;;  %v89_v9 = vld [vmem:[#allocation2 + $0x30] sm:$0xff] }
  0x4a   :  { %1119 = vmatpush3.bf16.msra.mxu0 %v1293_v21  ;;  %v116_v8 = vpack.c.bf16 %v95_v7, %v88_v6  ;;  %v96_v10 = vld [vmem:[#allocation2 + $0x68] sm:$0xff]  ;;  %v103_v11 = vld [vmem:[#allocation2 + $0xa0] sm:$0xff]  ;;  %v110_v12 = vld [vmem:[#allocation2 + $0xd8] sm:$0xff] }
  0x4b   :  { %1120 = vmatprep.subr.bf16.mxu0 %v1296_v24  ;;  %v1317_v13 = vld [vmem:[#allocation5 + $0x108] sm:$0xff]   ;;  %v117_v14 = vpack.c.bf16 %v96_v10, %v89_v9  ;;  %v124_v15 = vpack.c.bf16 %v110_v12, %v103_v11  ;;  %v1319_v16 = vld [vmem:[#allocation5 + $0x140] sm:$0xff]   ;;  %v94_v19 = vld [vmem:[#allocation2 + $0x58] sm:$0xff] }
  0x4c   :  { %1147 = vmatpush3.bf16.msra.mxu1 %v1295_v23  ;;  %v1320_v17 = vld [vmem:[#allocation5 + $0x100] sm:$0xff]   ;;  %v102_v20 = vld [vmem:[#allocation2 + $0x98] sm:$0xff]  ;;  %v109_v21 = vld [vmem:[#allocation2 + $0xd0] sm:$0xff] }
  0x4d   :  { %1148 = vmatprep.subr.bf16.mxu1 %v1298_v26  ;;  %v87_v18 = vld [vmem:[#allocation2 + $0x20] sm:$0xff]  ;;  %v123_v23 = vpack.c.bf16 %v109_v21, %v102_v20  ;;  %v101_v24 = vld [vmem:[#allocation2 + $0x90] sm:$0xff]  ;;  %v1326_v32 = vld [vmem:[#allocation7 + $0x10] sm:$0xff]  }
  0x4e   :  { %1121 = vmatpush3.bf16.msra.mxu0 %v1297_v25  ;;  %v115_v22 = vpack.c.bf16 %v94_v19, %v87_v18  ;;  %v108_v25 = vld [vmem:[#allocation2 + $0xc8] sm:$0xff]  ;;  %v1325_v31 = vld [vmem:[#allocation7 + $0x18] sm:$0xff]   ;;  %v1327_v33 = vld [vmem:[#allocation7 + $0x8] sm:$0xff]  }
  0x4f   :  { %1122 = vmatprep.subr.bf16.mxu0 %v1300_v28  ;;  %v122_v26 = vpack.c.bf16 %v108_v25, %v101_v24  ;;  %v1322_v28 = vld [vmem:[#allocation7 + $0x30] sm:$0xff]   ;;  %v1329_v35 = vld [vmem:[#allocation8 + $0x38] sm:$0xff]  }
  0x50   :  { %1149 = vmatpush3.bf16.msra.mxu1 %v1299_v27  ;;  %v1321_v27 = vld [vmem:[#allocation7 + $0x38] sm:$0xff]   ;;  %v1330_v36 = vld [vmem:[#allocation8 + $0x30] sm:$0xff]  }
  0x51   :  { %1150 = vmatprep.subr.bf16.mxu1 %v1302_v30  ;;  %v1324_v30 = vld [vmem:[#allocation7 + $0x20] sm:$0xff]   ;;  %v1333_v39 = vld [vmem:[#allocation8 + $0x18] sm:$0xff]  }
  0x52   :  { %1123 = vmatpush3.bf16.msra.mxu0 %v1301_v29  ;;  %v1323_v29 = vld [vmem:[#allocation7 + $0x28] sm:$0xff]   ;;  %v1038_v56 = vld [vmem:[%s1547_s2] ss:$0 sm:$0xff] }
  0x53   :  { %1164 = vmatprep.subr.bf16.mxu0 %v1304_v38  ;;  %v1332_v38 = vld [vmem:[#allocation8 + $0x20] sm:$0xff]  }
  0x54   :  { %1151 = vmatpush3.bf16.msra.mxu1 %v1303_v34  ;;  %v1328_v34 = vld [vmem:[#allocation7] sm:$0xff]  }
  0x55   :  { %564 = vmatmul.mubr.bf16.vlgmr.msra.gmra.mxu0 %v111_v37  ;;  %1215 = vmatprep.subr.bf16.mxu1 %v1318_v3  ;;  %v1331_v37 = vld [vmem:[#allocation8 + $0x28] sm:$0xff]  }
  0x56   :  { %1165 = vmatpush3.bf16.msra.mxu0 %v1305_v42  ;;  %571 = vmatprep.mubr.bf16.mxu0 %v119_v55 }
  0x57   :  { %613 = vmatmul.mubr.bf16.vlgmr.msra.gmra.mxu1 %v113_v45  ;;  %1166 = vmatprep.subr.bf16.mxu0 %v1306_v46 }
  0x58   :  { %620 = vmatprep.mubr.bf16.mxu1 %v121_v62  ;;  %1216 = vmatpush3.bf16.msra.mxu1 %v1318_v3 }
  0x59   :  { %1221 = vmatprep.subr.bf16.mxu1 %v1321_v27 }
  0x5a   :  { %1167 = vmatpush3.bf16.msra.mxu0 %v1307_v47 }
  0x5b   :  { %1168 = vmatprep.subr.bf16.mxu0 %v1308_v48 }
  0x5d   :  { %572 = vmatmul.mubr.bf16.gmra.mxu0 %v118_v58 }
  0x5e   :  { %1169 = vmatpush3.bf16.msra.mxu0 %v1309_v49  ;;  %661 = vmatprep.mubr.bf16.mxu0 %v116_v8 }
  0x5f   :  { %1170 = vmatprep.subr.bf16.mxu0 %v1310_v50  ;;  %621 = vmatmul.mubr.bf16.gmra.mxu1 %v120_v0 }
  0x60   :  { %1217 = vmatprep.mubr.msk.bf16.mxu1 %vm524_vm0, %v117_v14 }
  0x62   :  { %1171 = vmatpush3.bf16.msra.mxu0 %v1311_v51 }
  0x63   :  { %1172 = vmatprep.subr.bf16.mxu0 %v1312_v54 }
  0x66   :  { %1173 = vmatpush3.bf16.msra.mxu0 %v1313_v1 }
  0x67   :  { %1174 = vmatprep.subr.bf16.mxu0 %v1314_v2  ;;  %1218 = vmatmul.mubr.msk.bf16.vlgmr.msra.gmra.mxu1 %vm524_vm0, %v124_v15 }
  0x68   :  { %1222 = vmatpush3.bf16.msra.mxu1 %v1321_v27 }
  0x69   :  { %1223 = vmatprep.subr.bf16.mxu1 %v1322_v28 }
  0x6a   :  { %1175 = vmatpush3.bf16.msra.mxu0 %v1315_v4 }
  0x6b   :  { %1176 = vmatprep.subr.bf16.mxu0 %v1316_v5 }
  0x6c   :  { %1224 = vmatpush3.bf16.msra.mxu1 %v1322_v28 }
  0x6d   :  { %1225 = vmatprep.subr.bf16.mxu1 %v1323_v29 }
  0x6e   :  { %1177 = vmatpush3.bf16.msra.mxu0 %v1317_v13 }
  0x6f   :  { %1178 = vmatprep.subr.bf16.mxu0 %v1319_v16 }
  0x70   :  { %1226 = vmatpush3.bf16.msra.mxu1 %v1323_v29 }
  0x71   :  { %1227 = vmatprep.subr.bf16.mxu1 %v1324_v30 }
  0x72   :  { %1179 = vmatpush3.bf16.msra.mxu0 %v1320_v17 }
  0x73   :  { %1241 = vmatprep.subr.bf16.mxu0 %v1329_v35 }
  0x74   :  { %1228 = vmatpush3.bf16.msra.mxu1 %v1324_v30 }
  0x75   :  { %662 = vmatmul.mubr.bf16.vlgmr.msra.gmra.mxu0 %v115_v22  ;;  %1229 = vmatprep.subr.bf16.mxu1 %v1325_v31 }
  0x76   :  { %669 = vmatprep.mubr.bf16.mxu0 %v123_v23  ;;  %1242 = vmatpush3.bf16.msra.mxu0 %v1329_v35 }
  0x77   :  { %1243 = vmatprep.subr.bf16.mxu0 %v1330_v36 }
  0x78   :  { %1230 = vmatpush3.bf16.msra.mxu1 %v1325_v31 }
  0x79   :  { %1231 = vmatprep.subr.bf16.mxu1 %v1326_v32 }
  0x7a   :  { %1244 = vmatpush3.bf16.msra.mxu0 %v1330_v36 }
  0x7b   :  { %1245 = vmatprep.subr.bf16.mxu0 %v1331_v37 }
  0x7c   :  { %1232 = vmatpush3.bf16.msra.mxu1 %v1326_v32 }
  0x7d   :  { %670 = vmatmul.mubr.bf16.gmra.mxu0 %v122_v26  ;;  %1233 = vmatprep.subr.bf16.mxu1 %v1327_v33 }
  0x7e   :  { %1246 = vmatpush3.bf16.msra.mxu0 %v1331_v37 }
  0x7f   :  { %1247 = vmatprep.subr.bf16.mxu0 %v1332_v38 }
  0x80   :  { %1234 = vmatpush3.bf16.msra.mxu1 %v1327_v33 }
  0x81   :  { %1235 = vmatprep.subr.bf16.mxu1 %v1328_v34 }
  0x82   :  { %1248 = vmatpush3.bf16.msra.mxu0 %v1332_v38 }
  0x83   :  { %1249 = vmatprep.subr.bf16.mxu0 %v1333_v39 }
  0x84   :  { %1236 = vmatpush3.bf16.msra.mxu1 %v1328_v34 }
  0x86   :  { %1250 = vmatpush3.bf16.msra.mxu0 %v1333_v39  ;;  %v1334_v39 = vld [vmem:[#allocation8 + $0x10] sm:$0xff]  }
  0x87   :  { %1251 = vmatprep.subr.bf16.mxu0 %v1334_v39 }
  0x8a   :  { %1252 = vmatpush3.bf16.msra.mxu0 %v1334_v39 }
 0x115   :  { %v1124_v41 = vpop.f32.mrf.mxu0 }
 0x117   :  { %v1152_v40 = vpop.f32.mrf.mxu1  ;;  %v1125_v43 = vpop.f32.mrf.mxu0 }
 0x118   :  { %v1126_v55 = vadd.f32 %v1125_v43, %v1124_v41  ;;  %v1336_v41 = vld [vmem:[#allocation8] sm:$0xff]  }
 0x119   :  { %v1153_v42 = vpop.f32.mrf.mxu1  ;;  %v1127_v45 = vpop.f32.mrf.mxu0 }
 0x11a   :  { %v566_v59 = vadd.f32 %v1126_v55, %v1038_v56  ;;  %v1154_v60 = vadd.f32 %v1153_v42, %v1152_v40  ;;  %v1335_v40 = vld [vmem:[#allocation8 + $0x8] sm:$0xff]  }
 0x11b   :  { %v1155_v44 = vpop.f32.mrf.mxu1  ;;  %v1128_v48 = vpop.f32.mrf.mxu0  ;;  %1253 = vmatprep.subr.bf16.mxu0 %v1335_v40 }
 0x11c   :  { %v1129_v61 = vadd.f32 %v1128_v48, %v1127_v45  ;;  %v615_v2 = vadd.f32 %v1154_v60, %v566_v59  ;;  %1254 = vmatpush3.bf16.msra.mxu0 %v1335_v40 }
 0x11d   :  { %v1156_v46 = vpop.f32.mrf.mxu1  ;;  %v1130_v49 = vpop.f32.mrf.mxu0  ;;  %1255 = vmatprep.subr.bf16.mxu0 %v1336_v41 }
 0x11e   :  { %v569_v3 = vadd.f32 %v1129_v61, %v1038_v56  ;;  %v1157_v4 = vadd.f32 %v1156_v46, %v1155_v44  ;;  %v1090_v44 = vld [vmem:[%s1549_s4] ss:$0 sm:$0xff]  ;;  %s1469_s4 = smov [#allocation10]  }
 0x11f   :  { %v1158_v47 = vpop.f32.mrf.mxu1  ;;  %v1131_v51 = vpop.f32.mrf.mxu0 }
 0x120   :  { %v1132_v0 = vadd.f32 %v1131_v51, %v1130_v49  ;;  %v618_v12 = vadd.f32 %v1157_v4, %v569_v3  ;;  %1256 = vmatpush3.bf16.msra.mxu0 %v1336_v41 }
 0x121   :  { %v1159_v50 = vpop.f32.mrf.mxu1  ;;  %v1133_v53 = vpop.f32.mrf.mxu0 }
 0x122   :  { %v574_v9 = vadd.f32 %v1132_v0, %v1038_v56  ;;  %v1160_v10 = vadd.f32 %v1159_v50, %v1158_v47 }
 0x123   :  { %v1161_v52 = vpop.f32.mrf.mxu1  ;;  %v1134_v58 = vpop.f32.mrf.mxu0 }
 0x124   :  { %v1135_v13 = vadd.f32 %v1134_v58, %v1133_v53  ;;  %v623_v19 = vadd.f32 %v1160_v10, %v574_v9 }
 0x125   :  { %v1162_v54 = vpop.f32.mrf.mxu1 }
 0x126   :  { %v577_v21 = vadd.f32 %v1135_v13, %v1038_v56  ;;  %v1163_v22 = vadd.f32 %v1162_v54, %v1161_v52 }
 0x127   :  { %v1219_v57 = vpop.f32.mrf.mxu1 }
 0x128   :  { %v626_v30 = vadd.f32 %v1163_v22, %v577_v21 }
 0x129   :  { %v712_v63 = vpop.f32.mrf.mxu1 }
 0x12b   :  { %v1220_v7 = vpop.f32.mrf.mxu1 }
 0x12d   :  { %v715_v16 = vpop.f32.mrf.mxu1 }
 0x135   :  { %v1180_v62 = vpop.f32.mrf.mxu0 }
 0x137   :  { %v1181_v1 = vpop.f32.mrf.mxu0 }
 0x138   :  { %v1182_v5 = vadd.f32 %v1181_v1, %v1180_v62 }
 0x139   :  { %v1183_v6 = vpop.f32.mrf.mxu0 }
 0x13a   :  { %v664_v8 = vadd.f32 %v1182_v5, %v615_v2 }
 0x13b   :  { %v1184_v11 = vpop.f32.mrf.mxu0 }
 0x13c   :  { %v1185_v14 = vadd.f32 %v1184_v11, %v1183_v6  ;;  %v713_v17 = vadd.f32 %v712_v63, %v664_v8 }
 0x13d   :  { %v1186_v15 = vpop.f32.mrf.mxu0 }
 0x13e   :  { %v667_v18 = vadd.f32 %v1185_v14, %v618_v12  ;;  %v727_v26 = vmax.f32 %v713_v17, 0.0 }
 0x13f   :  { %v1187_v20 = vpop.f32.mrf.mxu0 }
 0x140   :  { %v1188_v23 = vadd.f32 %v1187_v20, %v1186_v15  ;;  %v716_v24 = vadd.f32 %v715_v16, %v667_v18 }
 0x141   :  { %v1189_v25 = vpop.f32.mrf.mxu0 }
 0x142   :  { %v672_v27 = vadd.f32 %v1188_v23, %v623_v19  ;;  %v728_v28 = vmax.f32 %v716_v24, 0.0 }
 0x143   :  { %v1190_v29 = vpop.f32.mrf.mxu0 }
 0x144   :  { %v731_v31 = vpack.c.bf16 %v728_v28, %v727_v26  ;;  %v1191_v32 = vadd.f32 %v1190_v29, %v1189_v25  ;;  %v721_v33 = vadd.f32 %v1219_v57, %v672_v27  ;;  %v1099_v57 = vld [vmem:[%s1551_s6] ss:$0 sm:$0xff]  ;;  %s1024_s6 = sshll.u32 %s1469_s4, 4  ;;  %s1025_s6 = int_to_ptr.vmem [resolvable:$true] %s1024_s6 }
 0x145   :  { %s1433_s26 = scalar_lea.vmem %s1025_s6, 512  ;;  %p1438_p7 = scmp.lt.s32.totalorder %s1025_s6, %s1025_s6 }
 0x146   :  { %v675_v34 = vadd.f32 %v1191_v32, %v626_v30  ;;  %1237 = vmatprep.mubr.bf16.mxu1 %v731_v31  ;;  %v729_v36 = vmax.f32 %v721_v33, 0.0  ;;  %p1434_p6 = scmp.ne.s32.totalorder %s1025_s6, %s1433_s26  ;;  %p1439_p8 = scmp.lt.s32.totalorder %s1433_s26, %s1433_s26 }
 0x148   :  { %v724_v35 = vadd.f32 %v1220_v7, %v675_v34  ;;  %p1440_p9 = por %p1439_p8, %p1438_p7 }
 0x14a   :  { %v730_v37 = vmax.f32 %v724_v35, 0.0  ;;  %p1441_p10 = pnand %p1440_p9, %p1434_p6 }
 0x14c   :  { %v732_v38 = vpack.c.bf16 %v730_v37, %v729_v36 }
 0x14e   :  { %1238 = vmatmul.mubr.bf16.vlgmr.msra.gmra.mxu1 %v732_v38 }
 0x20e   :  { %v1239_v42 = vpop.f32.mrf.mxu1 }
 0x20f   :  { %v847_v48 = vadd.f32 %v1239_v42, %v1090_v44 }
 0x210   :  { %v838_v43 = vpop.f32.mrf.mxu1 }
 0x211   :  { %v839_v46 = vadd.f32 %v1090_v44, %v838_v43  ;;  %v855_v54 = vmax.f32 %v847_v48, 0.0 }
 0x212   :  { %v1240_v45 = vpop.f32.mrf.mxu1 }
 0x213   :  { %v850_v47 = vadd.f32 %v1240_v45, %v1090_v44  ;;  %v853_v52 = vmax.f32 %v839_v46, 0.0 }
 0x214   :  { %v841_v49 = vpop.f32.mrf.mxu1 }
 0x215   :  { %v842_v50 = vadd.f32 %v1090_v44, %v841_v49  ;;  %v856_v51 = vmax.f32 %v850_v47, 0.0 }
 0x217   :  { %v854_v53 = vmax.f32 %v842_v50, 0.0  ;;  %v858_v56 = vpack.c.bf16 %v856_v51, %v855_v54 }
 0x219   :  { %v857_v55 = vpack.c.bf16 %v854_v53, %v853_v52 }
 0x21b   :  { %1257 = vmatprep.mubr.bf16.mxu0 %v857_v55 }
 0x21c   :  { %1258 = vmatmul.mubr.bf16.vlgmr.msra.gmra.mxu0 %v858_v56 }
 0x2dc   :  { %v1259_v58 = vpop.f32.mrf.mxu0 }
 0x2dd   :  { %v973_v59 = vadd.f32 %v1259_v58, %v1099_v57 }
 0x2de   :  { %v964_v60 = vpop.f32.mrf.mxu0 }
 0x2df   :  { %v965_v61 = vadd.f32 %v1099_v57, %v964_v60  ;;  %983 = vmax.xlane.f32.xlu1 %v973_v59 }
 0x2e0   :  { %v1260_v62 = vpop.f32.mrf.mxu0 }
 0x2e1   :  { %v976_v63 = vadd.f32 %v1260_v62, %v1099_v57  ;;  %979 = vmax.xlane.f32.xlu0 %v965_v61 }
 0x2e2   :  { %v967_v0 = vpop.f32.mrf.mxu0 }
 0x2e3   :  { %v968_v1 = vadd.f32 %v1099_v57, %v967_v0  ;;  %985 = vmax.xlane.f32.xlu1 %v976_v63 }
 0x2e5   :  { %981 = vmax.xlane.f32.xlu0 %v968_v1 }
 0x368   :  { %v984_v2 = vpop.xlane.xlu1 %983 }
 0x369   :  { %v989_v3 = vsub.f32 %v973_v59, %v984_v2 }
 0x36a   :  { %v980_v4 = vpop.xlane.xlu0 %979 }
 0x36b   :  { %v987_v5 = vsub.f32 %v965_v61, %v980_v4  ;;  %v995_v8 = vmul.f32 1.442695, %v989_v3 }
 0x36c   :  { %v986_v6 = vpop.xlane.xlu1 %985 }
 0x36d   :  { %v991_v7 = vmul.f32 1.442695, %v987_v5  ;;  %v990_v10 = vsub.f32 %v976_v63, %v986_v6 }
 0x36e   :  { %v982_v9 = vpop.xlane.xlu0 %981 }
 0x36f   :  { %1337 = vpow2.f32 %v991_v7  ;;  %v988_v11 = vsub.f32 %v968_v1, %v982_v9  ;;  %v997_v13 = vmul.f32 1.442695, %v990_v10 }
 0x370   :  { %1339 = vpow2.f32 %v995_v8 }
 0x371   :  { %v993_v12 = vmul.f32 1.442695, %v988_v11 }
 0x373   :  { %1341 = vpow2.f32 %v993_v12 }
 0x374   :  { %1343 = vpow2.f32 %v997_v13 }
 0x37c   :  { %v1338_v14 = vpop.eup %1337 }
 0x37d   :  { %999 = vadd.xlane.f32.xlu0 %v1338_v14  ;;  %v1340_v15 = vpop.eup %1339 }
 0x380   :  { %v1342_v16 = vpop.eup %1341 }
 0x381   :  { %1003 = vadd.xlane.f32.xlu0 %v1340_v15  ;;  %1001 = vadd.xlane.f32.xlu1 %v1342_v16  ;;  %v1344_v17 = vpop.eup %1343 }
 0x385   :  { %1005 = vadd.xlane.f32.xlu1 %v1344_v17 }
 0x406   :  { %v1000_v18 = vpop.xlane.xlu0 %999 }
 0x407   :  { %1345 = vrcp.f32 %v1000_v18 }
 0x40a   :  { %v1002_v19 = vpop.xlane.xlu1 %1001  ;;  %v1004_v20 = vpop.xlane.xlu0 %1003 }
 0x40b   :  { %1347 = vrcp.f32 %v1002_v19 }
 0x40c   :  { %1349 = vrcp.f32 %v1004_v20 }
 0x40e   :  { %v1006_v21 = vpop.xlane.xlu1 %1005 }
 0x40f   :  { %1351 = vrcp.f32 %v1006_v21 }
 0x414   :  { %v1346_v22 = vpop.eup %1345 }
 0x415   :  { %v1008_v23 = vmul.f32 %v1346_v22, %v1338_v14 }
 0x417   :  { %1015 = vst [vmem:[#allocation10] sm:$0xff] %v1008_v23 }
 0x418   :  { %v1348_v24 = vpop.eup %1347 }
 0x419   :  { %v1350_v25 = vpop.eup %1349  ;;  %v1010_v26 = vmul.f32 %v1348_v24, %v1342_v16 }
 0x41a   :  { %v1012_v27 = vmul.f32 %v1350_v25, %v1340_v15 }
 0x41b   :  { %1016 = vst [vmem:[#allocation10 + $0x8] sm:$0xff] %v1010_v26 }
 0x41c   :  { %v1352_v28 = vpop.eup %1351  ;;  %1017 = vst [vmem:[#allocation10 + $0x10] sm:$0xff] %v1012_v27 }
 0x41d   :  { %v1014_v29 = vmul.f32 %v1352_v28, %v1344_v17 }
 0x41f   :  { %1018 = vst [vmem:[#allocation10 + $0x18] sm:$0xff] %v1014_v29 }
 0x420   :  { %1444 = shalt.err (!%p1441_p10)
}
 0x421   :  { %s1470_s27 = smov 128   ;;  %s1471_s28 = smov 8  }
 0x422   :  { %1030 = dma.vmem_to_hbm [thread:$0]  %s1025_s6, 512, %s1552_s7, [#allocation4], %s1470_s27, %s1470_s27, %s1471_s28  }
 0x423   :  { %1459 = dma.done.wait [#allocation4], 512  }
 0x424   :  { %1460 = vsyncadd [#allocation4], 4294966784 }
 0x425   :  { %1034 = vsyncpa [#allocation3], 1 }
 0x426   :  { %1035 = vsyncpa [#allocation6], 1 }
 0x427   :  { %1036 = vsyncpa [#allocation9], 1 }
 0x428   :  { %1037 = vsyncpa [#allocation4], 1 }

</bundles_post_ra>
